<compile_context>
chip_gen: v5e
topology: v5e:2x2
jax: 0.10.0
libtpu: 0.0.40
codegen_flags: <defaults>
</compile_context>

<pallas_src>
import functools

import jax
import jax.numpy as jnp
from jax.experimental import pallas as pl
from jax.experimental.pallas import tpu as pltpu


_VMEM_LIMIT_BYTES = 48 * 1024 * 1024   # > 16/32 MiB scoped defaults, < 64 MiB v7x physical
_TILE_DATA_BUDGET = 24 * 1024 * 1024   # in+out, double-buffered, must fit here


def _se_block_kernel(x_ref, w1t_ref, w2t_ref, o_ref, *, inv_hw):
    # x_ref : (bb, C, HW)  native NCHW rows, spatial on the lane axis
    # w1t_ref: (C, Cr)     fc[0].weight.T  (resident; same block every step)
    # w2t_ref: (Cr, C)     fc[2].weight.T
    # o_ref : (bb, C, HW)
    x = x_ref[...]

    # --- squeeze: global average pool over the spatial (lane) axis, f32 accum ---
    y = jnp.sum(x, axis=-1, dtype=jnp.float32) * inv_hw               # (bb, C)

    # --- excitation: FC -> ReLU -> FC -> Sigmoid (tiny; not perf-relevant) ---
    h = jnp.dot(y, w1t_ref[...], preferred_element_type=jnp.float32)  # (bb, Cr)
    h = jnp.maximum(h, 0.0)
    s = jnp.dot(h, w2t_ref[...], preferred_element_type=jnp.float32)  # (bb, C)
    s = jax.nn.sigmoid(s)

    # --- scale: per-channel gate, broadcast along the lane (spatial) axis ---
    gate = s.astype(x.dtype)[:, :, None]                              # (bb, C, 1)
    o_ref[...] = (x * gate).astype(o_ref.dtype)


def _pick_batch_tile(B, per_row_bytes):
    """Largest divisor of B whose double-buffered in+out tiles fit the budget."""
    best = 1
    for bb in range(1, B + 1):
        if B % bb:
            continue
        if 4 * bb * per_row_bytes <= _TILE_DATA_BUDGET:  # 2 buffers x (in + out)
            best = bb
    return best


@jax.jit
def se_block(x_nchw, w1, w2):
    """x_nchw: (B, C, H, W); w1: (C//r, C) = fc[0].weight; w2: (C, C//r) = fc[2].weight."""
    B, C, H, W = x_nchw.shape
    HW = H * W
    Cr = w1.shape[0]

    # Collapse spatial dims: metadata-only reshape, no HBM traffic.
    x3 = x_nchw.reshape(B, C, HW)
    # Tiny one-time weight transposes (Cr x C elements).
    w1_t = w1.T   # (C, Cr)
    w2_t = w2.T   # (Cr, C)

    per_row_bytes = C * HW * x_nchw.dtype.itemsize
    bb = _pick_batch_tile(B, per_row_bytes)

    kernel = functools.partial(_se_block_kernel, inv_hw=1.0 / HW)

    out3 = pl.pallas_call(
        kernel,
        out_shape=jax.ShapeDtypeStruct((B, C, HW), x_nchw.dtype),
        grid=(B // bb,),
        in_specs=[
            pl.BlockSpec((bb, C, HW), lambda b: (b, 0, 0)),  # batch tile, pipelined
            pl.BlockSpec((C, Cr), lambda b: (0, 0)),         # weights: resident
            pl.BlockSpec((Cr, C), lambda b: (0, 0)),
        ],
        out_specs=pl.BlockSpec((bb, C, HW), lambda b: (b, 0, 0)),
        compiler_params=pltpu.CompilerParams(
            dimension_semantics=("parallel",),
            vmem_limit_bytes=_VMEM_LIMIT_BYTES,
        ),
    )(x3, w1_t, w2_t)

    return out3.reshape(B, C, H, W)


def reference_se_block(x, w1, w2):
    """Pure-JAX reference mirroring the PyTorch module (torch weight layout)."""
    y = jnp.mean(x, axis=(2, 3))                 # (B, C)
    h = jnp.maximum(y @ w1.T, 0.0)               # (B, Cr)
    s = jax.nn.sigmoid(h @ w2.T)                 # (B, C)
    return x * s[:, :, None, None]


if __name__ == "__main__":
    key = jax.random.PRNGKey(0)
    k_x, k_w1, k_w2 = jax.random.split(key, 3)

    B, C, H, W = 2, 32, 8, 8
    reduction = 16
    Cr = C // reduction

    x = jax.random.normal(k_x, (B, C, H, W), dtype=jnp.float32)
    # torch fc[0].weight: (Cr, C); torch fc[2].weight: (C, Cr).
    w1 = jax.random.normal(k_w1, (Cr, C), dtype=jnp.float32) * 0.1
    w2 = jax.random.normal(k_w2, (C, Cr), dtype=jnp.float32) * 0.1

    out = se_block(x, w1, w2)
    out = jax.block_until_ready(out)

    ref = reference_se_block(x, w1, w2)
    assert out.shape == (B, C, H, W)
    assert jnp.allclose(out, ref, atol=1e-5, rtol=1e-5), "mismatch vs reference"

    print("KERNEL_OK")
</pallas_src>

<mosaic_0001>
module attributes {stable_mosaic.version = 11 : i64} {
  func.func @_se_block_kernel(%arg0: i32, %arg1: memref<2x32x64xf32, #tpu.memory_space<vmem>>, %arg2: memref<32x2xf32, #tpu.memory_space<vmem>>, %arg3: memref<2x32xf32, #tpu.memory_space<vmem>>, %arg4: memref<2x32x64xf32, #tpu.memory_space<vmem>>) attributes {dimension_semantics = [#tpu.dimension_semantics<parallel>], iteration_bounds = array<i64: 1>, scalar_prefetch = 0 : i64, scratch_operands = 0 : i64, tpu.core_type = #tpu.core_type<tc>, window_params = [{transform_indices = @transform_0, window_bounds = array<i64: 2, 32, 64>}, {pipeline_mode = #tpu.pipeline_mode<synchronous>, transform_indices = @transform_1, window_bounds = array<i64: 32, 2>}, {pipeline_mode = #tpu.pipeline_mode<synchronous>, transform_indices = @transform_2, window_bounds = array<i64: 2, 32>}, {transform_indices = @transform_3, window_bounds = array<i64: 2, 32, 64>}]} {
    %c0 = arith.constant 0 : index
    %c0_0 = arith.constant 0 : index
    %c0_1 = arith.constant 0 : index
    %0 = vector.load %arg1[%c0, %c0_0, %c0_1] : memref<2x32x64xf32, #tpu.memory_space<vmem>>, vector<2x32x64xf32>
    %cst = arith.constant dense<0.000000e+00> : vector<2x32xf32>
    %1 = vector.multi_reduction <add>, %0, %cst [2] : vector<2x32x64xf32> to vector<2x32xf32>
    %cst_2 = arith.constant 1.562500e-02 : f32
    %2 = vector.broadcast %cst_2 : f32 to vector<2x32xf32>
    %3 = arith.mulf %1, %2 : vector<2x32xf32>
    %c0_3 = arith.constant 0 : index
    %c0_4 = arith.constant 0 : index
    %4 = vector.load %arg2[%c0_3, %c0_4] : memref<32x2xf32, #tpu.memory_space<vmem>>, vector<32x2xf32>
    %cst_5 = arith.constant dense<0.000000e+00> : vector<2x2xf32>
    %5 = tpu.matmul %3, %4, %cst_5 {dimension_numbers = #tpu.dot_dimension_numbers<[1], [0], [0], [1], [0, 0, 1, 1], [], []>} : vector<2x32xf32>, vector<32x2xf32>, vector<2x2xf32> -> vector<2x2xf32>
    %cst_6 = arith.constant 0.000000e+00 : f32
    %6 = vector.broadcast %cst_6 : f32 to vector<2x2xf32>
    %7 = arith.maximumf %5, %6 : vector<2x2xf32>
    %c0_7 = arith.constant 0 : index
    %c0_8 = arith.constant 0 : index
    %8 = vector.load %arg3[%c0_7, %c0_8] : memref<2x32xf32, #tpu.memory_space<vmem>>, vector<2x32xf32>
    %cst_9 = arith.constant dense<0.000000e+00> : vector<2x32xf32>
    %9 = tpu.matmul %7, %8, %cst_9 {dimension_numbers = #tpu.dot_dimension_numbers<[1], [0], [0], [1], [0, 0, 1, 1], [], []>} : vector<2x2xf32>, vector<2x32xf32>, vector<2x32xf32> -> vector<2x32xf32>
    %10 = arith.negf %9 : vector<2x32xf32>
    %11 = math.exp %10 : vector<2x32xf32>
    %cst_10 = arith.constant 1.000000e+00 : f32
    %12 = vector.broadcast %cst_10 : f32 to vector<2x32xf32>
    %13 = arith.addf %12, %11 : vector<2x32xf32>
    %14 = arith.divf %12, %13 : vector<2x32xf32>
    %15 = vector.shape_cast %14 : vector<2x32xf32> to vector<2x32x1xf32>
    %16 = vector.broadcast %15 : vector<2x32x1xf32> to vector<2x32x64xf32>
    %17 = arith.mulf %0, %16 : vector<2x32x64xf32>
    %c0_11 = arith.constant 0 : index
    %c0_12 = arith.constant 0 : index
    %c0_13 = arith.constant 0 : index
    %18 = vector.load %arg4[%c0_11, %c0_12, %c0_13] : memref<2x32x64xf32, #tpu.memory_space<vmem>>, vector<2x32x64xf32>
    tpu.vector_store %arg4[%c0_11, %c0_12, %c0_13], %17 {strides = array<i32>} : memref<2x32x64xf32, #tpu.memory_space<vmem>>, vector<2x32x64xf32>,
    return
  }
  func.func @transform_0(%arg0: i32) -> (i32, i32, i32) {
    %c0_i32 = arith.constant 0 : i32
    %c0_i32_0 = arith.constant 0 : i32
    %c0_i32_1 = arith.constant 0 : i32
    return %arg0, %c0_i32, %c0_i32_0 : i32, i32, i32
  }
  func.func @transform_1(%arg0: i32) -> (i32, i32) {
    %c0_i32 = arith.constant 0 : i32
    %c0_i32_0 = arith.constant 0 : i32
    %c0_i32_1 = arith.constant 0 : i32
    return %c0_i32, %c0_i32_0 : i32, i32
  }
  func.func @transform_2(%arg0: i32) -> (i32, i32) {
    %c0_i32 = arith.constant 0 : i32
    %c0_i32_0 = arith.constant 0 : i32
    %c0_i32_1 = arith.constant 0 : i32
    return %c0_i32, %c0_i32_0 : i32, i32
  }
  func.func @transform_3(%arg0: i32) -> (i32, i32, i32) {
    %c0_i32 = arith.constant 0 : i32
    %c0_i32_0 = arith.constant 0 : i32
    %c0_i32_1 = arith.constant 0 : i32
    return %arg0, %c0_i32, %c0_i32_0 : i32, i32, i32
  }
}

</mosaic_0001>

<bundles_post_ra>
// kernel: se_block.1
= control target key start
LH: loop header
LB: loop body
LE: loop exit
PB: predicated region body
PF: predicated region fallthrough
CT: control target
= control target key end

     0   :  { %vm22_vm0 = vcmask 523264   ;;  %v67_v23 = vlaneseq  ;;  %vm72_vm1 = vcmask 130112   ;;  %vm76_vm2 = vcmask 195712   ;;  %s381_s0 = inlined_call_operand.vmem [shape: f32[2,32,64], index: 0, kind: input, shape index: {}]   ;;  %s382_s1 = inlined_call_operand.vmem [shape: f32[32,2], index: 1, kind: input, shape index: {}]   ;;  %s383_s2 = inlined_call_operand.vmem [shape: f32[2,32], index: 2, kind: input, shape index: {}]   ;;  %s384_s3 = inlined_call_operand.vmem [shape: f32[2,32,64], index: 3, kind: output, shape index: {}]  }
   0x1   :  { %v273_v0 = vld [vmem:[%s381_s0 + $0x20] sm:$0xff]  ;;  %v283_v2 = vld [vmem:[%s381_s0 + $0x10] sm:$0xff]  ;;  %v294_v6 = vld [vmem:[%s381_s0 + $0x28] sm:$0xff]  ;;  %vm80_vm3 = vcmask 261312   ;;  %vm89_vm4 = vcmask 1041409   ;;  %vm91_vm5 = vcmask 261120  }
   0x2   :  { %v278_v1 = vld [vmem:[%s381_s0] sm:$0xff]  ;;  %v35_v3 = vsel %vm22_vm0, %v273_v0, 0.0  ;;  %v29_v5 = vsel %vm22_vm0, %v283_v2, 0.0  ;;  %v299_v7 = vld [vmem:[%s381_s0 + $0x8] sm:$0xff]  ;;  %v304_v8 = vld [vmem:[%s381_s0 + $0x30] sm:$0xff]  ;;  %v38_v9 = vsel %vm22_vm0, %v294_v6, 0.0 }
   0x3   :  { %v23_v4 = vsel %vm22_vm0, %v278_v1, 0.0  ;;  %36 = vadd.xlane.f32.xlu1 %v35_v3  ;;  %30 = vadd.xlane.f32.xlu2 %v29_v5  ;;  %v26_v10 = vsel %vm22_vm0, %v299_v7, 0.0  ;;  %v41_v11 = vsel %vm22_vm0, %v304_v8, 0.0  ;;  %v315_v12 = vld [vmem:[%s381_s0 + $0x38] sm:$0xff]  ;;  %v57_v17 = vld [vmem:[%s382_s1 + $0x10] sm:$0xff]  ;;  %v56_v18 = vld [vmem:[%s382_s1 + $0x8] sm:$0xff] }
   0x4   :  { %24 = vadd.xlane.f32.xlu0 %v23_v4  ;;  %v320_v13 = vld [vmem:[%s381_s0 + $0x18] sm:$0xff]  ;;  %v44_v14 = vsel %vm22_vm0, %v315_v12, 0.0  ;;  %v55_v19 = vld [vmem:[%s382_s1] sm:$0xff]  ;;  %v68_v24 = vand.u32 127, %v67_v23  ;;  %vm120_vm6 = vcmask 1041408   ;;  %vm116_vm7 = vcmask 15360  }
   0x5   :  { %v32_v15 = vsel %vm22_vm0, %v320_v13, 0.0  ;;  %v58_v16 = vld [vmem:[%s382_s1 + $0x18] sm:$0xff]  ;;  %v115_v56 = vld [vmem:[%s383_s2] sm:$0x3]  ;;  %v165_v59 = vshrl.u32 %v67_v23, 7 }
   0x6   :  { %106 = vmatpush.msra.mxu0 %v58_v16  ;;  %v70_v27 = vadd.s32 4294967288, %v68_v24  ;;  %v74_v36 = vadd.s32 4294967280, %v68_v24  ;;  %v78_v40 = vadd.s32 4294967272, %v68_v24  ;;  %234 = vmatpush.msk.msra.mxu1 %vm120_vm6, %v115_v56 }
   0x7   :  { %237 = vset.pattern.permute.xlu2 %v165_v59  ;;  %v178_v60 = vadd.s32 16, %v165_v59  ;;  %v172_v61 = vadd.s32 8, %v165_v59 }
   0x8   :  { %107 = vmatpush.msra.mxu0 %v57_v17 }
   0x9   :  { %239 = vset.pattern.permute.xlu1 %v178_v60  ;;  %238 = vset.pattern.permute.xlu0 %v172_v61 }
   0xa   :  { %108 = vmatpush.msra.mxu0 %v56_v18 }
   0xb   :  { %39 = vadd.xlane.f32.xlu1 %v38_v9  ;;  %42 = vadd.xlane.f32.xlu2 %v41_v11 }
   0xc   :  { %27 = vadd.xlane.f32.xlu0 %v26_v10  ;;  %109 = vmatpush.msra.mxu0 %v55_v19 }
  0x13   :  { %45 = vadd.xlane.f32.xlu1 %v44_v14 }
  0x14   :  { %33 = vadd.xlane.f32.xlu0 %v32_v15 }
  0x76   :  { %v37_v20 = vpop.xlane.xlu1 %36  ;;  %v31_v22 = vpop.xlane.xlu2 %30 }
  0x77   :  { %v25_v21 = vpop.xlane.xlu0 %24  ;;  %v51_v31 = vmul.f32 0.015625, %v37_v20  ;;  %v49_v37 = vmul.f32 0.015625, %v31_v22 }
  0x78   :  { %v47_v32 = vmul.f32 0.015625, %v25_v21  ;;  %v184_v21 = vadd.s32 24, %v165_v59 }
  0x79   :  { %v82_v38 = vperm.slane %v51_v31, %v68_v24  ;;  %v75_v48 = vperm.slane %v49_v37, %v74_v36 }
  0x7a   :  { %v69_v39 = vperm.slane %v47_v32, %v68_v24 }
  0x7e   :  { %v40_v25 = vpop.xlane.xlu1 %39  ;;  %v43_v30 = vpop.xlane.xlu2 %42 }
  0x7f   :  { %v28_v26 = vpop.xlane.xlu0 %27  ;;  %v52_v28 = vmul.f32 0.015625, %v40_v25  ;;  %v53_v33 = vmul.f32 0.015625, %v43_v30 }
  0x80   :  { %v48_v29 = vmul.f32 0.015625, %v28_v26 }
  0x81   :  { %v83_v34 = vperm.slane %v52_v28, %v70_v27  ;;  %v85_v41 = vperm.slane %v53_v33, %v74_v36 }
  0x82   :  { %v71_v35 = vperm.slane %v48_v29, %v70_v27 }
  0x83   :  { %v84_v44 = vsel %vm72_vm1, %v83_v34, %v82_v38 }
  0x84   :  { %v73_v45 = vsel %vm72_vm1, %v71_v35, %v69_v39  ;;  %v86_v52 = vsel %vm76_vm2, %v85_v41, %v84_v44 }
  0x85   :  { %v77_v51 = vsel %vm76_vm2, %v75_v48, %v73_v45 }
  0x86   :  { %v46_v42 = vpop.xlane.xlu1 %45 }
  0x87   :  { %v34_v43 = vpop.xlane.xlu0 %33  ;;  %v54_v46 = vmul.f32 0.015625, %v46_v42 }
  0x88   :  { %v50_v47 = vmul.f32 0.015625, %v34_v43 }
  0x89   :  { %v87_v49 = vperm.slane %v54_v46, %v78_v40 }
  0x8a   :  { %v79_v50 = vperm.slane %v50_v47, %v78_v40 }
  0x8b   :  { %v88_v54 = vsel %vm80_vm3, %v87_v49, %v86_v52 }
  0x8c   :  { %v81_v53 = vsel %vm80_vm3, %v79_v50, %v77_v51 }
  0x8d   :  { %v90_v55 = vsel %vm89_vm4, %v88_v54, %v81_v53 }
  0x8e   :  { %233 = vmatmul.msk.f32.vlgmr.msra.gmra.mxu0 %vm91_vm5, %v90_v55 }
 0x10b   :  { %v111_v57 = vpop.f32.mrf.mxu0 }
 0x10c   :  { %v114_v58 = vmax.f32 %v111_v57, 0.0 }
 0x10e   :  { %235 = vmatmul.msk.f32.vlgmr.msra.gmra.mxu1 %vm116_vm7, %v114_v58 }
 0x18b   :  { %v141_v62 = vpop.f32.mrf.mxu1 }
 0x18c   :  { %v236_v63 = vmul.f32 -1.442695, %v141_v62 }
 0x18e   :  { %246 = vpow2.f32 %v236_v63 }
 0x194   :  { %v247_v3 = vpop.eup %246 }
 0x195   :  { %v147_v4 = vadd.f32 1.0, %v247_v3 }
 0x197   :  { %248 = vrcp.f32 %v147_v4  ;;  %v159_v11 = vand.u32 2147483648, %v147_v4  ;;  %v157_v15 = vand.u32 2147483647, %v147_v4  ;;  %vm153_vm9 = vweird.f32 %v147_v4 }
 0x199   :  { %v160_v17 = vor.u32 1.1754944e-38, %v159_v11  ;;  %vm158_vm11 = vcmp.eq.f32.partialorder %v157_v15, 8.507059e+37 }
 0x19d   :  { %v249_v5 = vpop.eup %248 }
 0x19e   :  { %v149_v9 = vmul.f32 %v249_v5, %v147_v4  ;;  %vm154_vm8 = vweird.f32 %v249_v5 }
 0x19f   :  { %vm155_vm10 = vmor %vm153_vm9, %vm154_vm8 }
 0x1a0   :  { %v150_v10 = vsub.f32 1.0, %v149_v9 }
 0x1a2   :  { %v151_v14 = vmul.f32 %v249_v5, %v150_v10 }
 0x1a4   :  { %v152_v16 = vadd.f32 %v249_v5, %v151_v14 }
 0x1a6   :  { %v156_v18 = vsel %vm155_vm10, %v249_v5, %v152_v16 }
 0x1a7   :  { %v161_v19 = vsel %vm158_vm11, %v160_v17, %v156_v18 }
 0x1a8   :  { %v163_v20 = vperm.slane %v161_v19, 0  ;;  %v188_v22 = vperm.slane %v161_v19, 1 }
 0x1aa   :  { %180 = vperm.xlu1 %239, %v163_v20   ;;  %174 = vperm.xlu0 %238, %v163_v20  }
 0x1ab   :  { %168 = vperm.xlu2 %237, %v163_v20  }
 0x1b2   :  { %242 = vset.pattern.permute.xlu1 %v172_v61  ;;  %245 = vset.pattern.permute.xlu0 %v184_v21 }
 0x1b3   :  { %240 = vset.pattern.permute.xlu2 %v184_v21 }
 0x1ba   :  { %199 = vperm.xlu1 %242, %v188_v22  }
 0x1bb   :  { %186 = vperm.xlu2 %240, %v163_v20  }
 0x1c2   :  { %244 = vset.pattern.permute.xlu1 %v184_v21 }
 0x1c3   :  { %241 = vset.pattern.permute.xlu2 %v165_v59 }
 0x1ca   :  { %211 = vperm.xlu1 %244, %v188_v22  }
 0x1cb   :  { %193 = vperm.xlu2 %241, %v188_v22  }
 0x1d3   :  { %243 = vset.pattern.permute.xlu2 %v178_v60 }
 0x1db   :  { %205 = vperm.xlu2 %243, %v188_v22  }
 0x205   :  { %v169_v23 = vpop.permute.xlu2 %168 }
 0x206   :  { %v213_v24 = vmul.f32 %v169_v23, %v278_v1 }
 0x208   :  { %221 = vst.msk [vmem:[%s384_s3] sm:$0xff] %vm22_vm0, %v213_v24 }
 0x215   :  { %v187_v25 = vpop.permute.xlu2 %186 }
 0x216   :  { %v216_v26 = vmul.f32 %v187_v25, %v320_v13 }
 0x218   :  { %224 = vst.msk [vmem:[%s384_s3 + $0x18] sm:$0xff] %vm22_vm0, %v216_v26 }
 0x21c   :  { %v181_v27 = vpop.permute.xlu1 %180  ;;  %v175_v28 = vpop.permute.xlu0 %174 }
 0x21d   :  { %v215_v29 = vmul.f32 %v181_v27, %v283_v2  ;;  %v214_v30 = vmul.f32 %v175_v28, %v299_v7 }
 0x21f   :  { %223 = vst.msk [vmem:[%s384_s3 + $0x10] sm:$0xff] %vm22_vm0, %v215_v29 }
 0x220   :  { %222 = vst.msk [vmem:[%s384_s3 + $0x8] sm:$0xff] %vm22_vm0, %v214_v30 }
 0x225   :  { %v194_v1 = vpop.permute.xlu2 %193 }
 0x226   :  { %v217_v13 = vmul.f32 %v194_v1, %v273_v0 }
 0x228   :  { %225 = vst.msk [vmem:[%s384_s3 + $0x20] sm:$0xff] %vm22_vm0, %v217_v13 }
 0x22c   :  { %v200_v2 = vpop.permute.xlu1 %199 }
 0x22d   :  { %v218_v7 = vmul.f32 %v200_v2, %v294_v6 }
 0x22f   :  { %226 = vst.msk [vmem:[%s384_s3 + $0x28] sm:$0xff] %vm22_vm0, %v218_v7 }
 0x235   :  { %v206_v31 = vpop.permute.xlu2 %205 }
 0x236   :  { %v219_v32 = vmul.f32 %v206_v31, %v304_v8 }
 0x238   :  { %227 = vst.msk [vmem:[%s384_s3 + $0x30] sm:$0xff] %vm22_vm0, %v219_v32 }
 0x23c   :  { %v212_v0 = vpop.permute.xlu1 %211 }
 0x23d   :  { %v220_v33 = vmul.f32 %v212_v0, %v315_v12 }
 0x23f   :  { %228 = vst.msk [vmem:[%s384_s3 + $0x38] sm:$0xff] %vm22_vm0, %v220_v33 }

</bundles_post_ra>
